<compile_context>
chip_gen: v5e
topology: v5e:2x2
jax: 0.10.0
libtpu: 0.0.40
codegen_flags: <defaults>
</compile_context>

<pallas_src>
import numpy as np
import jax
import jax.numpy as jnp
from jax import lax
from jax.experimental import pallas as pl
from jax.experimental.pallas import tpu as pltpu

FEAT = 8             # raw node feature dim (logical)
EMB = 32             # gnn hidden / node_rep dim (logical)
LANE = 128           # TPU lane width
EMB_PAD = LANE       # padded embedding dim (lane-dense)
ROW_TILE = 128       # stage-2 output rows per grid step
GNN_TILE = 512       # adjacency tile for large graphs


def _round_up(x, m):
    return (x + m - 1) // m * m


def _vmem_limit_bytes():
    # ~3/4 of physical VMEM: ~96 MiB on v5e/v6e (128 MiB), ~48 MiB on v7x (64 MiB).
    try:
        cap = pltpu.get_tpu_info().vmem_capacity_bytes
        return int(min(cap * 3 // 4, 100 * 1024 * 1024))
    except Exception:
        return 32 * 1024 * 1024


VMEM_LIMIT = _vmem_limit_bytes()


# ----------------------------- GNN kernel (tiled) ----------------------------
def gnn_kernel(h_ref, adj_ref, w1_ref, b1_ref, w2_ref, b2_ref, out_ref, acc_ref):
    # node_rep = relu((adj @ h) @ W1 + b1) @ W2 + b2, tiled over (row tiles, k tiles).
    # h = relu(x @ W0) is precomputed in the wrapper, bf16, fully VMEM-resident.
    k = pl.program_id(1)
    tk = adj_ref.shape[1]

    @pl.when(k == 0)
    def _():
        acc_ref[...] = jnp.zeros_like(acc_ref)

    off = pl.multiple_of(k * tk, tk)
    h_k = h_ref[pl.ds(off, tk), :]                       # bf16 (tk, EMB_PAD) slice
    acc_ref[...] += jnp.dot(adj_ref[...], h_k, preferred_element_type=jnp.float32)

    @pl.when(k == pl.num_programs(1) - 1)
    def _():
        z = jnp.maximum(
            jnp.dot(acc_ref[...], w1_ref[...], preferred_element_type=jnp.float32)
            + b1_ref[...], 0.0)
        out_ref[...] = (
            jnp.dot(z, w2_ref[...], preferred_element_type=jnp.float32) + b2_ref[...])


def run_gnn(h_pad, adj, w1, b1, w2, b2, *, tm, tk):
    n_pad = h_pad.shape[0]
    grid = (n_pad // tm, n_pad // tk)
    return pl.pallas_call(
        gnn_kernel,
        out_shape=jax.ShapeDtypeStruct((n_pad, EMB_PAD), jnp.float32),
        grid_spec=pltpu.PrefetchScalarGridSpec(
            num_scalar_prefetch=0,
            grid=grid,
            in_specs=[
                pl.BlockSpec((n_pad, EMB_PAD), lambda i, k: (0, 0)),    # h (whole, resident)
                pl.BlockSpec((tm, tk), lambda i, k: (i, k)),            # adjacency tile (bf16)
                pl.BlockSpec((EMB_PAD, EMB_PAD), lambda i, k: (0, 0)),  # W1
                pl.BlockSpec((1, EMB_PAD), lambda i, k: (0, 0)),        # b1
                pl.BlockSpec((EMB_PAD, EMB_PAD), lambda i, k: (0, 0)),  # W2
                pl.BlockSpec((1, EMB_PAD), lambda i, k: (0, 0)),        # b2
            ],
            out_specs=pl.BlockSpec((tm, EMB_PAD), lambda i, k: (i, 0)),
            scratch_shapes=[pltpu.VMEM((tm, EMB_PAD), jnp.float32)],
        ),
        compiler_params=pltpu.CompilerParams(
            dimension_semantics=("parallel", "arbitrary"),
            vmem_limit_bytes=VMEM_LIMIT),
    )(h_pad, adj, w1, b1, w2, b2)


# -------------------------- stage-2 assembly kernel --------------------------
def stage2_kernel(src_ref, gid_ref, msk_ref,       # SMEM (scalar prefetch)
                  nrep_ref, pool_ref,              # VMEM-resident inputs
                  out_ref,                         # VMEM output tile
                  tile_ref):                       # VMEM scratch tile
    rows = out_ref.shape[0]
    base = pl.program_id(0) * rows

    def row_body(j, carry):
        m = base + j
        src = src_ref[m]
        gid = gid_ref[m]
        msk = msk_ref[m].astype(jnp.float32)       # 0 for condition / padded rows
        left = nrep_ref[pl.ds(src, 1), :]
        right = pool_ref[pl.ds(gid, 1), :]
        tile_ref[pl.ds(j, 1), :] = jnp.concatenate([left, right], axis=1) * msk
        return carry

    lax.fori_loop(0, rows, row_body, 0, unroll=4)
    out_ref[...] = tile_ref[...]                   # one dense unmasked (ROW_TILE, 256) store


def run_stage2(node_rep_pad, cond_pool_pad, row_src, row_gid, row_msk):
    n_pad, emb = node_rep_pad.shape
    b_pad = cond_pool_pad.shape[0]
    m_pad = row_src.shape[0]
    grid = (m_pad // ROW_TILE,)
    # TODO(synk): on v7x (64 MiB VMEM) cap whole-node_rep residency for huge graphs
    #             (fall back to memory_space=pl.ANY + manual row-gather DMAs).
    return pl.pallas_call(
        stage2_kernel,
        out_shape=jax.ShapeDtypeStruct((m_pad, 2 * emb), jnp.float32),
        grid_spec=pltpu.PrefetchScalarGridSpec(
            num_scalar_prefetch=3,
            grid=grid,
            in_specs=[
                pl.BlockSpec((n_pad, emb), lambda i, src, gid, msk: (0, 0)),
                pl.BlockSpec((b_pad, emb), lambda i, src, gid, msk: (0, 0)),
            ],
            out_specs=pl.BlockSpec((ROW_TILE, 2 * emb),
                                   lambda i, src, gid, msk: (i, 0)),
            scratch_shapes=[pltpu.VMEM((ROW_TILE, 2 * emb), jnp.float32)],
        ),
        compiler_params=pltpu.CompilerParams(
            dimension_semantics=("parallel",),     # no cross-step state any more
            vmem_limit_bytes=VMEM_LIMIT),
    )(row_src, row_gid, row_msk, node_rep_pad, cond_pool_pad)


# ------------------------------- wrapper -------------------------------------
def reactant_stage2_forward(x, edge_index, batch_vec, condition_idx, primary_idx,
                            mlabes, params):
    """Mirrors ReactantStage2.forward: returns (graph dict, tensor_2_head, mlabes, node_rep)."""
    n = x.shape[0]
    b_sz = len(condition_idx)
    w0, w1, b1, w2, b2 = params

    # ---- tile selection: full-array tile for small graphs, 512 tiles otherwise ----
    if n <= GNN_TILE:
        n_pad = _round_up(max(n, LANE), LANE)
        tm = tk = n_pad
    else:
        tm = tk = GNN_TILE
        n_pad = _round_up(n, GNN_TILE)

    # ---- h = relu(x @ W0), hoisted out of the GNN hot loop (tiny matmul) ----
    x_f = jnp.asarray(x, jnp.float32)
    h = jnp.maximum(jnp.dot(x_f, jnp.asarray(w0, jnp.float32),
                            precision=lax.Precision.HIGHEST), 0.0)
    h_pad = jnp.zeros((n_pad, EMB_PAD), jnp.bfloat16).at[:n, :EMB].set(
        h.astype(jnp.bfloat16))

    # ---- dense adjacency with self loops, built on device directly in bf16 ----
    src = jnp.asarray(edge_index[0], jnp.int32)
    dst = jnp.asarray(edge_index[1], jnp.int32)
    adj = jnp.zeros((n_pad, n_pad), jnp.bfloat16)
    adj = adj.at[dst, src].add(jnp.ones(src.shape, jnp.bfloat16))
    diag = jnp.arange(n)
    adj = adj.at[diag, diag].add(jnp.ones((n,), jnp.bfloat16))   # (1 + eps) * I, eps = 0

    # ---- zero-pad the MLP parameters to lane width (padded cols give exact zeros) ----
    w1_p = jnp.zeros((EMB_PAD, EMB_PAD), jnp.float32).at[:EMB, :EMB].set(w1)
    b1_p = jnp.zeros((1, EMB_PAD), jnp.float32).at[:, :EMB].set(b1)
    w2_p = jnp.zeros((EMB_PAD, EMB_PAD), jnp.float32).at[:EMB, :EMB].set(w2)
    b2_p = jnp.zeros((1, EMB_PAD), jnp.float32).at[:, :EMB].set(b2)

    node_rep_pad = run_gnn(h_pad, adj, w1_p, b1_p, w2_p, b2_p, tm=tm, tk=tk)
    # NOTE: padded node_rep rows equal relu(b1)@W2+b2 (non-zero); they are never indexed
    # by stage-2 or the pooling below, and are sliced off before returning.

    # ---- host glue: small int index vectors (no dense one-hot matrices) ----
    batch_np = np.asarray(batch_vec)
    row_src, row_gid, row_msk = [], [], []
    c_max = max([len(c) for c in condition_idx] + [1])
    cond_idx_flat = np.zeros((b_sz * c_max,), np.int32)
    cond_cnt = np.zeros((b_sz,), np.int32)
    for b in range(b_sz):
        g_nodes = np.nonzero(batch_np == b)[0]            # global ids, enumerate order
        cond_loc = np.asarray(condition_idx[b], np.int64)
        pri_loc = np.asarray(primary_idx[b], np.int64)
        cond_g = g_nodes[cond_loc] if cond_loc.size else np.zeros((0,), np.int64)
        pri_g = g_nodes[pri_loc] if pri_loc.size else np.zeros((0,), np.int64)
        cond_cnt[b] = cond_g.size
        cond_idx_flat[b * c_max: b * c_max + cond_g.size] = cond_g
        for gi in pri_g:                                  # primary rows: [pri_rep | cond_pool]
            row_src.append(int(gi)); row_gid.append(b); row_msk.append(1)
        for _ in range(cond_g.size):                      # condition rows: all zeros
            row_src.append(0); row_gid.append(0); row_msk.append(0)

    m_rows = len(row_src)
    m_pad = _round_up(max(m_rows, ROW_TILE), ROW_TILE)
    pad = m_pad - m_rows
    row_src_j = jnp.asarray(np.asarray(row_src + [0] * pad, np.int32))
    row_gid_j = jnp.asarray(np.asarray(row_gid + [0] * pad, np.int32))
    row_msk_j = jnp.asarray(np.asarray(row_msk + [0] * pad, np.int32))

    # ---- per-graph condition-mean pool, hoisted out of the stage-2 kernel (tiny XLA) ----
    cond_idx_j = jnp.asarray(cond_idx_flat)
    cond_cnt_j = jnp.asarray(cond_cnt)
    cond_rep = node_rep_pad[cond_idx_j].reshape(b_sz, c_max, EMB_PAD)
    valid = (jnp.arange(c_max)[None, :] < cond_cnt_j[:, None]).astype(jnp.float32)
    cond_sum = jnp.sum(cond_rep * valid[:, :, None], axis=1)
    inv = jnp.where(cond_cnt_j > 0,
                    1.0 / jnp.maximum(cond_cnt_j.astype(jnp.float32), 1.0), 0.0)
    cond_pool = cond_sum * inv[:, None]                   # empty condition set -> zeros
    b_pad = _round_up(max(b_sz, 8), 8)
    cond_pool_pad = jnp.zeros((b_pad, EMB_PAD), jnp.float32).at[:b_sz].set(cond_pool)

    out_pad = run_stage2(node_rep_pad, cond_pool_pad, row_src_j, row_gid_j, row_msk_j)

    # un-pad back to the logical shapes of the PyTorch module
    node_rep = node_rep_pad[:n, :EMB]
    tensor_2_head = jnp.concatenate(
        [out_pad[:m_rows, :EMB], out_pad[:m_rows, EMB_PAD:EMB_PAD + EMB]], axis=1)

    graph = {"x": x, "edge_index": edge_index, "batch": batch_vec}
    return graph, tensor_2_head, mlabes, node_rep


# ----------------------------- reference (checking) ---------------------------
def _reference(x, adj, params, batch_vec, condition_idx, primary_idx):
    w0, w1, b1, w2, b2 = [np.asarray(p, np.float32) for p in params]
    h = np.maximum(np.asarray(x, np.float32) @ w0, 0.0)
    # match kernel numerics: h and adjacency are bf16 for the aggregation matmul
    h = np.asarray(jnp.asarray(h).astype(jnp.bfloat16).astype(jnp.float32))
    adj = np.asarray(jnp.asarray(np.asarray(adj, np.float32))
                     .astype(jnp.bfloat16).astype(jnp.float32))
    agg = adj @ h
    z = np.maximum(agg @ w1 + b1, 0.0)
    node_rep = z @ w2 + b2
    rows = []
    batch_vec = np.asarray(batch_vec)
    for b in range(len(condition_idx)):
        g_nodes = np.nonzero(batch_vec == b)[0]
        single = node_rep[g_nodes]
        cond = single[np.asarray(condition_idx[b], np.int64)] if len(condition_idx[b]) \
            else np.zeros((0, EMB), np.float32)
        pri = single[np.asarray(primary_idx[b], np.int64)]
        pool = cond.mean(0, keepdims=True) if cond.shape[0] > 0 else np.zeros((1, EMB), np.float32)
        new_rep = np.concatenate([pri, np.broadcast_to(pool, pri.shape)], axis=1)
        rows.append(new_rep)
        rows.append(np.zeros((cond.shape[0], new_rep.shape[1]), np.float32))
    return node_rep, np.concatenate(rows, axis=0)


# --------------------------------- main ---------------------------------------
if __name__ == "__main__":
    key = jax.random.PRNGKey(0)
    k0, k1, k2, k3, k4, kx = jax.random.split(key, 6)
    w0 = jax.random.normal(k0, (FEAT, EMB), jnp.float32) * 0.1
    w1 = jax.random.normal(k1, (EMB, EMB), jnp.float32) * 0.1
    b1 = jax.random.normal(k2, (1, EMB), jnp.float32) * 0.1
    w2 = jax.random.normal(k3, (EMB, EMB), jnp.float32) * 0.1
    b2 = jax.random.normal(k4, (1, EMB), jnp.float32) * 0.1
    params = (w0, w1, b1, w2, b2)

    # small batch of 3 graphs: 5 + 6 + 4 nodes = 15 nodes total
    batch_vec = np.array([0] * 5 + [1] * 6 + [2] * 4, np.int32)
    N = batch_vec.shape[0]
    x = jax.random.normal(kx, (N, FEAT), jnp.float32)
    # chain edges inside each graph (undirected -> both directions)
    src_l, dst_l = [], []
    for b in range(3):
        ids = np.nonzero(batch_vec == b)[0]
        for a, c in zip(ids[:-1], ids[1:]):
            src_l += [int(a), int(c)]; dst_l += [int(c), int(a)]
    edge_index = (np.asarray(src_l, np.int32), np.asarray(dst_l, np.int32))

    condition_idx = [[3, 4], [0, 1], []]          # local per-graph indices (graph 2 empty)
    primary_idx = [[0, 1, 2], [2, 3, 4, 5], [0, 1, 2, 3]]
    mlabes = [["C", "N", "O", "C", "C"], ["C"] * 6, ["O"] * 4]

    graph, t2h, ml, node_rep = reactant_stage2_forward(
        x, edge_index, batch_vec, condition_idx, primary_idx, mlabes, params)
    t2h = jax.block_until_ready(t2h)

    # cross-check against a plain-numpy reference of the same forward
    adj_ref = np.zeros((N, N), np.float32)
    for s, d in zip(edge_index[0], edge_index[1]):
        adj_ref[int(d), int(s)] += 1.0
    adj_ref += np.eye(N, dtype=np.float32)
    nr_ref, t2h_ref = _reference(x, adj_ref, params, batch_vec, condition_idx, primary_idx)
    assert t2h.shape == t2h_ref.shape, (t2h.shape, t2h_ref.shape)
    np.testing.assert_allclose(np.asarray(node_rep), nr_ref, rtol=1e-3, atol=1e-3)
    np.testing.assert_allclose(np.asarray(t2h), t2h_ref, rtol=1e-3, atol=1e-3)

    print("KERNEL_OK")
</pallas_src>

<mosaic_0001>
module attributes {stable_mosaic.version = 11 : i64} {
  func.func @gnn_kernel(%arg0: i32, %arg1: i32, %arg2: memref<128x128xbf16, #tpu.memory_space<vmem>>, %arg3: memref<128x128xbf16, #tpu.memory_space<vmem>>, %arg4: memref<128x128xf32, #tpu.memory_space<vmem>>, %arg5: memref<1x128xf32, #tpu.memory_space<vmem>>, %arg6: memref<128x128xf32, #tpu.memory_space<vmem>>, %arg7: memref<1x128xf32, #tpu.memory_space<vmem>>, %arg8: memref<128x128xf32, #tpu.memory_space<vmem>>, %arg9: memref<128x128xf32, #tpu.memory_space<vmem>>) attributes {dimension_semantics = [#tpu.dimension_semantics<parallel>, #tpu.dimension_semantics<arbitrary>], iteration_bounds = array<i64: 1, 1>, scalar_prefetch = 0 : i64, scratch_operands = 1 : i64, tpu.core_type = #tpu.core_type<tc>, window_params = [{pipeline_mode = #tpu.pipeline_mode<synchronous>, transform_indices = @transform_0, window_bounds = array<i64: 128, 128>}, {transform_indices = @transform_1, window_bounds = array<i64: 128, 128>}, {pipeline_mode = #tpu.pipeline_mode<synchronous>, transform_indices = @transform_2, window_bounds = array<i64: 128, 128>}, {pipeline_mode = #tpu.pipeline_mode<synchronous>, transform_indices = @transform_3, window_bounds = array<i64: 1, 128>}, {pipeline_mode = #tpu.pipeline_mode<synchronous>, transform_indices = @transform_4, window_bounds = array<i64: 128, 128>}, {pipeline_mode = #tpu.pipeline_mode<synchronous>, transform_indices = @transform_5, window_bounds = array<i64: 1, 128>}, {transform_indices = @transform_6, window_bounds = array<i64: 128, 128>}]} {
    %c0_i32 = arith.constant 0 : i32
    %0 = arith.cmpi eq, %arg1, %c0_i32 : i32
    %1 = arith.extui %0 : i1 to i32
    %c0_i32_0 = arith.constant 0 : i32
    %2 = arith.cmpi ne, %1, %c0_i32_0 : i32
    scf.if %2 {
      %cst_9 = arith.constant 0.000000e+00 : f32
      %15 = vector.broadcast %cst_9 : f32 to vector<128x128xf32>
      %c0_10 = arith.constant 0 : index
      %c0_11 = arith.constant 0 : index
      %16 = vector.load %arg9[%c0_10, %c0_11] : memref<128x128xf32, #tpu.memory_space<vmem>>, vector<128x128xf32>
      tpu.vector_store %arg9[%c0_10, %c0_11], %15 {strides = array<i32>} : memref<128x128xf32, #tpu.memory_space<vmem>>, vector<128x128xf32>,
    } else {
    }
    %c128_i32 = arith.constant 128 : i32
    %3 = arith.muli %arg1, %c128_i32 : i32
    %4 = tpu.assume_multiple %3, 128 : i32
    %5 = arith.index_cast %4 : i32 to index
    %c0 = arith.constant 0 : index
    %6 = vector.load %arg2[%5, %c0] : memref<128x128xbf16, #tpu.memory_space<vmem>>, vector<128x128xbf16>
    %c0_1 = arith.constant 0 : index
    %c0_2 = arith.constant 0 : index
    %7 = vector.load %arg9[%c0_1, %c0_2] : memref<128x128xf32, #tpu.memory_space<vmem>>, vector<128x128xf32>
    %c0_3 = arith.constant 0 : index
    %c0_4 = arith.constant 0 : index
    %8 = vector.load %arg3[%c0_3, %c0_4] : memref<128x128xbf16, #tpu.memory_space<vmem>>, vector<128x128xbf16>
    %cst = arith.constant dense<0.000000e+00> : vector<128x128xf32>
    %9 = tpu.matmul %8, %6, %cst {dimension_numbers = #tpu.dot_dimension_numbers<[1], [0], [0], [1], [0, 0, 1, 1], [], []>} : vector<128x128xbf16>, vector<128x128xbf16>, vector<128x128xf32> -> vector<128x128xf32>
    %10 = arith.addf %7, %9 : vector<128x128xf32>
    %c0_5 = arith.constant 0 : index
    %c0_6 = arith.constant 0 : index
    %11 = vector.load %arg9[%c0_5, %c0_6] : memref<128x128xf32, #tpu.memory_space<vmem>>, vector<128x128xf32>
    tpu.vector_store %arg9[%c0_5, %c0_6], %10 {strides = array<i32>} : memref<128x128xf32, #tpu.memory_space<vmem>>, vector<128x128xf32>,
    %c0_i32_7 = arith.constant 0 : i32
    %12 = arith.cmpi eq, %arg1, %c0_i32_7 : i32
    %13 = arith.extui %12 : i1 to i32
    %c0_i32_8 = arith.constant 0 : i32
    %14 = arith.cmpi ne, %13, %c0_i32_8 : i32
    scf.if %14 {
      %c0_9 = arith.constant 0 : index
      %c0_10 = arith.constant 0 : index
      %15 = vector.load %arg9[%c0_9, %c0_10] : memref<128x128xf32, #tpu.memory_space<vmem>>, vector<128x128xf32>
      %c0_11 = arith.constant 0 : index
      %c0_12 = arith.constant 0 : index
      %16 = vector.load %arg4[%c0_11, %c0_12] : memref<128x128xf32, #tpu.memory_space<vmem>>, vector<128x128xf32>
      %cst_13 = arith.constant dense<0.000000e+00> : vector<128x128xf32>
      %17 = tpu.matmul %15, %16, %cst_13 {dimension_numbers = #tpu.dot_dimension_numbers<[1], [0], [0], [1], [0, 0, 1, 1], [], []>} : vector<128x128xf32>, vector<128x128xf32>, vector<128x128xf32> -> vector<128x128xf32>
      %c0_14 = arith.constant 0 : index
      %c0_15 = arith.constant 0 : index
      %18 = vector.load %arg5[%c0_14, %c0_15] : memref<1x128xf32, #tpu.memory_space<vmem>>, vector<1x128xf32>
      %19 = vector.broadcast %18 : vector<1x128xf32> to vector<128x128xf32>
      %20 = arith.addf %17, %19 : vector<128x128xf32>
      %cst_16 = arith.constant 0.000000e+00 : f32
      %21 = vector.broadcast %cst_16 : f32 to vector<128x128xf32>
      %22 = arith.maximumf %20, %21 : vector<128x128xf32>
      %c0_17 = arith.constant 0 : index
      %c0_18 = arith.constant 0 : index
      %23 = vector.load %arg6[%c0_17, %c0_18] : memref<128x128xf32, #tpu.memory_space<vmem>>, vector<128x128xf32>
      %cst_19 = arith.constant dense<0.000000e+00> : vector<128x128xf32>
      %24 = tpu.matmul %22, %23, %cst_19 {dimension_numbers = #tpu.dot_dimension_numbers<[1], [0], [0], [1], [0, 0, 1, 1], [], []>} : vector<128x128xf32>, vector<128x128xf32>, vector<128x128xf32> -> vector<128x128xf32>
      %c0_20 = arith.constant 0 : index
      %c0_21 = arith.constant 0 : index
      %25 = vector.load %arg7[%c0_20, %c0_21] : memref<1x128xf32, #tpu.memory_space<vmem>>, vector<1x128xf32>
      %26 = vector.broadcast %25 : vector<1x128xf32> to vector<128x128xf32>
      %27 = arith.addf %24, %26 : vector<128x128xf32>
      %c0_22 = arith.constant 0 : index
      %c0_23 = arith.constant 0 : index
      %28 = vector.load %arg8[%c0_22, %c0_23] : memref<128x128xf32, #tpu.memory_space<vmem>>, vector<128x128xf32>
      tpu.vector_store %arg8[%c0_22, %c0_23], %27 {strides = array<i32>} : memref<128x128xf32, #tpu.memory_space<vmem>>, vector<128x128xf32>,
    } else {
    }
    return
  }
  func.func @transform_0(%arg0: i32, %arg1: i32) -> (i32, i32) {
    %c0_i32 = arith.constant 0 : i32
    %c0_i32_0 = arith.constant 0 : i32
    %c0_i32_1 = arith.constant 0 : i32
    return %c0_i32, %c0_i32_0 : i32, i32
  }
  func.func @transform_1(%arg0: i32, %arg1: i32) -> (i32, i32) {
    %c0_i32 = arith.constant 0 : i32
    return %arg0, %arg1 : i32, i32
  }
  func.func @transform_2(%arg0: i32, %arg1: i32) -> (i32, i32) {
    %c0_i32 = arith.constant 0 : i32
    %c0_i32_0 = arith.constant 0 : i32
    %c0_i32_1 = arith.constant 0 : i32
    return %c0_i32, %c0_i32_0 : i32, i32
  }
  func.func @transform_3(%arg0: i32, %arg1: i32) -> (i32, i32) {
    %c0_i32 = arith.constant 0 : i32
    %c0_i32_0 = arith.constant 0 : i32
    %c0_i32_1 = arith.constant 0 : i32
    return %c0_i32, %c0_i32_0 : i32, i32
  }
  func.func @transform_4(%arg0: i32, %arg1: i32) -> (i32, i32) {
    %c0_i32 = arith.constant 0 : i32
    %c0_i32_0 = arith.constant 0 : i32
    %c0_i32_1 = arith.constant 0 : i32
    return %c0_i32, %c0_i32_0 : i32, i32
  }
  func.func @transform_5(%arg0: i32, %arg1: i32) -> (i32, i32) {
    %c0_i32 = arith.constant 0 : i32
    %c0_i32_0 = arith.constant 0 : i32
    %c0_i32_1 = arith.constant 0 : i32
    return %c0_i32, %c0_i32_0 : i32, i32
  }
  func.func @transform_6(%arg0: i32, %arg1: i32) -> (i32, i32) {
    %c0_i32 = arith.constant 0 : i32
    %c0_i32_0 = arith.constant 0 : i32
    return %arg0, %c0_i32 : i32, i32
  }
}

</mosaic_0001>

<bundles_post_ra>
// kernel: tpu_custom_call.1
= control target key start
LH: loop header
LB: loop body
LE: loop exit
PB: predicated region body
PF: predicated region fallthrough
CT: control target
= control target key end

     0   :  { %11 = vsyncpa [#allocation4], 0  ;;  %s914_s0 = inlined_call_operand.hbm [shape: bf16[128,128], index: 0, kind: input, shape index: {}]   ;;  %s915_s1 = inlined_call_operand.hbm [shape: bf16[128,128], index: 1, kind: input, shape index: {}]   ;;  %s916_s2 = inlined_call_operand.hbm [shape: f32[128,128], index: 2, kind: input, shape index: {}]   ;;  %s917_s3 = inlined_call_operand.vmem [shape: f32[1,128], index: 3, kind: input, shape index: {}]   ;;  %s918_s4 = inlined_call_operand.hbm [shape: f32[128,128], index: 4, kind: input, shape index: {}]   ;;  %s919_s5 = inlined_call_operand.vmem [shape: f32[1,128], index: 5, kind: input, shape index: {}]   ;;  %s920_s6 = inlined_call_operand.hbm [shape: f32[128,128], index: 6, kind: output, shape index: {}]  }
   0x1   :  { %12 = vsyncpa [#allocation7], 0 }
   0x2   :  { %13 = vsyncpa [#allocation10], 0 }
   0x3   :  { %14 = vsyncpa [#allocation5], 0  ;;  %s32_s23 = sshll.u32 %s915_s1, 4  ;;  %s840_s24 = smov [#allocation6]   ;;  %s33_s23 = int_to_ptr.hbm [resolvable:$true] %s32_s23 }
   0x4   :  { %s34_s25 = sshll.u32 %s840_s24, 4  ;;  %s19_s28 = sshll.u32 %s914_s0, 4  ;;  %s35_s25 = int_to_ptr.vmem [resolvable:$true] %s34_s25  ;;  %s20_s28 = int_to_ptr.hbm [resolvable:$true] %s19_s28 }
   0x5   :  { %s841_s29 = smov 64   ;;  %s842_s30 = smov 4  }
   0x6   :  { %40 = dma.hbm_to_vmem [thread:$0]  %s33_s23, 1024, %s35_s25, [#allocation7], %s841_s29, %s841_s29, %s842_s30  }
   0x7   :  { %s843_s7 = smov [#allocation3]   ;;  %s45_s11 = sshll.u32 %s916_s2, 4  ;;  %s46_s11 = int_to_ptr.hbm [resolvable:$true] %s45_s11 }
   0x8   :  { %s21_s8 = sshll.u32 %s843_s7, 4  ;;  %s844_s1 = smov [#allocation8]   ;;  %s22_s8 = int_to_ptr.vmem [resolvable:$true] %s21_s8 }
   0x9   :  { %27 = dma.hbm_to_vmem [thread:$0]  %s20_s28, 1024, %s22_s8, [#allocation4], %s841_s29, %s841_s29, %s842_s30  }
   0xa   :  { %s47_s12 = sshll.u32 %s844_s1, 4  ;;  %s60_s0 = sshll.u32 %s918_s4, 4  ;;  %s48_s12 = int_to_ptr.vmem [resolvable:$true] %s47_s12  ;;  %s61_s0 = int_to_ptr.hbm [resolvable:$true] %s60_s0 }
   0xb   :  { %s845_s15 = smov 128   ;;  %s846_s16 = smov 8  }
   0xc   :  { %53 = dma.hbm_to_vmem [thread:$0]  %s46_s11, 2048, %s48_s12, [#allocation7], %s845_s15, %s845_s15, %s846_s16  }
   0xd   :  { %s847_s17 = smov [#allocation9]  }
   0xe   :  { %s62_s18 = sshll.u32 %s847_s17, 4  ;;  %s63_s18 = int_to_ptr.vmem [resolvable:$true] %s62_s18 }
   0xf   :  { %68 = dma.hbm_to_vmem [thread:$0]  %s61_s0, 2048, %s63_s18, [#allocation10], %s845_s15, %s845_s15, %s846_s16  }
  0x10   :  { %832 = dma.done.wait [#allocation4], 1024  }
  0x11   :  { %833 = vsyncadd [#allocation4], 4294966272 }
  0x12   :  { %834 = dma.done.wait [#allocation7], 3072  }
  0x13   :  { %835 = vsyncadd [#allocation7], 4294964224 }
  0x14   :  { %836 = dma.done.wait [#allocation10], 2048  }
  0x15   :  { %837 = vsyncadd [#allocation10], 4294965248  ;;  %v652_v0 = vld [vmem:[#allocation3 + $0x38] sm:$0xff]  ;;  %v651_v1 = vld [vmem:[#allocation3 + $0x30] sm:$0xff]  ;;  %s564_s23 = sshll.u32 %s920_s6, 4  ;;  %s565_s23 = int_to_ptr.hbm [resolvable:$true] %s564_s23 }
  0x16   :  { %256 = vmatpush.bf16.msra.mxu0 %v652_v0  ;;  %661 = vmatpush.bf16.msra.mxu3 %v652_v0  ;;  %v650_v2 = vld [vmem:[#allocation3 + $0x28] sm:$0xff]  ;;  %v649_v3 = vld [vmem:[#allocation3 + $0x20] sm:$0xff]  ;;  %v648_v4 = vld [vmem:[#allocation3 + $0x18] sm:$0xff] }
  0x17   :  { %v647_v5 = vld [vmem:[#allocation3 + $0x10] sm:$0xff]  ;;  %v646_v6 = vld [vmem:[#allocation3 + $0x8] sm:$0xff]  ;;  %v645_v7 = vld [vmem:[#allocation3] sm:$0xff] }
  0x18   :  { %v653_v8 = vld [vmem:[#allocation6] sm:$0xff]  ;;  %v659_v9 = vld [vmem:[#allocation6 + $0x30] sm:$0xff]  ;;  %v654_v10 = vld [vmem:[#allocation6 + $0x8] sm:$0xff] }
  0x19   :  { %v660_v11 = vld [vmem:[#allocation6 + $0x38] sm:$0xff]  ;;  %v655_v12 = vld [vmem:[#allocation6 + $0x10] sm:$0xff]  ;;  %v369_v16 = vld [vmem:[#allocation8 + $0x68] sm:$0xff] }
  0x1a   :  { %257 = vmatpush.bf16.msra.mxu0 %v651_v1  ;;  %662 = vmatpush.bf16.msra.mxu3 %v651_v1  ;;  %v656_v13 = vld [vmem:[#allocation6 + $0x18] sm:$0xff]  ;;  %v370_v15 = vld [vmem:[#allocation8 + $0x70] sm:$0xff]  ;;  %v368_v17 = vld [vmem:[#allocation8 + $0x60] sm:$0xff] }
  0x1b   :  { %v371_v14 = vld [vmem:[#allocation8 + $0x78] sm:$0xff]  ;;  %v366_v19 = vld [vmem:[#allocation8 + $0x50] sm:$0xff]  ;;  %v365_v20 = vld [vmem:[#allocation8 + $0x48] sm:$0xff] }
  0x1c   :  { %376 = vmatpush.msra.mxu1 %v371_v14  ;;  %v367_v18 = vld [vmem:[#allocation8 + $0x58] sm:$0xff]  ;;  %v657_v21 = vld [vmem:[#allocation6 + $0x20] sm:$0xff]  ;;  %v362_v24 = vld [vmem:[#allocation8 + $0x30] sm:$0xff] }
  0x1d   :  { %v364_v22 = vld [vmem:[#allocation8 + $0x40] sm:$0xff]  ;;  %v363_v23 = vld [vmem:[#allocation8 + $0x38] sm:$0xff]  ;;  %v361_v25 = vld [vmem:[#allocation8 + $0x28] sm:$0xff] }
  0x1e   :  { %258 = vmatpush.bf16.msra.mxu0 %v650_v2  ;;  %663 = vmatpush.bf16.msra.mxu3 %v650_v2  ;;  %v360_v26 = vld [vmem:[#allocation8 + $0x20] sm:$0xff]  ;;  %v359_v27 = vld [vmem:[#allocation8 + $0x18] sm:$0xff]  ;;  %v358_v28 = vld [vmem:[#allocation8 + $0x10] sm:$0xff] }
  0x1f   :  { %377 = vmatpush.msra.mxu1 %v370_v15  ;;  %v357_v29 = vld [vmem:[#allocation8 + $0x8] sm:$0xff]  ;;  %v356_v31 = vld [vmem:[#allocation8] sm:$0xff]  ;;  %v472_v44 = vld [vmem:[#allocation9 + $0x78] sm:$0xff] }
  0x20   :  { %v658_v30 = vld [vmem:[#allocation6 + $0x28] sm:$0xff]  ;;  %v471_v45 = vld [vmem:[#allocation9 + $0x70] sm:$0xff]  ;;  %477 = vmatpush.msra.mxu2 %v472_v44  ;;  %v469_v47 = vld [vmem:[#allocation9 + $0x60] sm:$0xff] }
  0x21   :  { %378 = vmatpush.msra.mxu1 %v369_v16  ;;  %v470_v46 = vld [vmem:[#allocation9 + $0x68] sm:$0xff]  ;;  %v468_v48 = vld [vmem:[#allocation9 + $0x58] sm:$0xff]  ;;  %v467_v50 = vld [vmem:[#allocation9 + $0x50] sm:$0xff] }
  0x22   :  { %259 = vmatpush.bf16.msra.mxu0 %v649_v3  ;;  %664 = vmatpush.bf16.msra.mxu3 %v649_v3  ;;  %v466_v51 = vld [vmem:[#allocation9 + $0x48] sm:$0xff]  ;;  %v465_v52 = vld [vmem:[#allocation9 + $0x40] sm:$0xff]  ;;  %v464_v53 = vld [vmem:[#allocation9 + $0x38] sm:$0xff] }
  0x23   :  { %379 = vmatpush.msra.mxu1 %v368_v17  ;;  %478 = vmatpush.msra.mxu2 %v471_v45  ;;  %v463_v55 = vld [vmem:[#allocation9 + $0x30] sm:$0xff]  ;;  %v462_v56 = vld [vmem:[#allocation9 + $0x28] sm:$0xff]  ;;  %v461_v57 = vld [vmem:[#allocation9 + $0x20] sm:$0xff] }
  0x24   :  { %v460_v58 = vld [vmem:[#allocation9 + $0x18] sm:$0xff]  ;;  %v459_v61 = vld [vmem:[#allocation9 + $0x10] sm:$0xff]  ;;  %v458_v62 = vld [vmem:[#allocation9 + $0x8] sm:$0xff] }
  0x25   :  { %380 = vmatpush.msra.mxu1 %v367_v18  ;;  %479 = vmatpush.msra.mxu2 %v470_v46  ;;  %v457_v63 = vld [vmem:[#allocation9] sm:$0xff] }
  0x26   :  { %260 = vmatpush.bf16.msra.mxu0 %v648_v4  ;;  %665 = vmatpush.bf16.msra.mxu3 %v648_v4  ;;  %v710_v0 = vld [vmem:[%s917_s3] ss:$0 sm:$0xff] }
  0x27   :  { %381 = vmatpush.msra.mxu1 %v366_v19  ;;  %480 = vmatpush.msra.mxu2 %v469_v47 }
  0x29   :  { %382 = vmatpush.msra.mxu1 %v365_v20  ;;  %481 = vmatpush.msra.mxu2 %v468_v48 }
  0x2a   :  { %261 = vmatpush.bf16.msra.mxu0 %v647_v5  ;;  %666 = vmatpush.bf16.msra.mxu3 %v647_v5 }
  0x2b   :  { %383 = vmatpush.msra.mxu1 %v364_v22  ;;  %482 = vmatpush.msra.mxu2 %v467_v50 }
  0x2d   :  { %384 = vmatpush.msra.mxu1 %v363_v23  ;;  %483 = vmatpush.msra.mxu2 %v466_v51 }
  0x2e   :  { %262 = vmatpush.bf16.msra.mxu0 %v646_v6  ;;  %667 = vmatpush.bf16.msra.mxu3 %v646_v6 }
  0x2f   :  { %385 = vmatpush.msra.mxu1 %v362_v24  ;;  %484 = vmatpush.msra.mxu2 %v465_v52 }
  0x31   :  { %386 = vmatpush.msra.mxu1 %v361_v25  ;;  %485 = vmatpush.msra.mxu2 %v464_v53 }
  0x32   :  { %263 = vmatpush.bf16.msra.mxu0 %v645_v7  ;;  %668 = vmatpush.bf16.msra.mxu3 %v645_v7 }
  0x33   :  { %387 = vmatpush.msra.mxu1 %v360_v26  ;;  %486 = vmatpush.msra.mxu2 %v463_v55 }
  0x35   :  { %264 = vmatmul.bf16.vlgmr.msra.gmra.mxu0 %v653_v8  ;;  %294 = vmatmul.bf16.vlgmr.msra.gmra.mxu3 %v659_v9 }
  0x36   :  { %669 = vmatpush.msrb.mxu3 %v371_v14  ;;  %388 = vmatpush.msra.mxu1 %v359_v27 }
  0x37   :  { %487 = vmatpush.msra.mxu2 %v462_v56 }
  0x38   :  { %670 = vmatpush.msrb.mxu3 %v370_v15  ;;  %389 = vmatpush.msra.mxu1 %v358_v28 }
  0x39   :  { %488 = vmatpush.msra.mxu2 %v461_v57 }
  0x3a   :  { %671 = vmatpush.msrb.mxu3 %v369_v16  ;;  %390 = vmatpush.msra.mxu1 %v357_v29 }
  0x3b   :  { %489 = vmatpush.msra.mxu2 %v460_v58 }
  0x3c   :  { %672 = vmatpush.msrb.mxu3 %v368_v17  ;;  %391 = vmatpush.msra.mxu1 %v356_v31 }
  0x3d   :  { %490 = vmatpush.msra.mxu2 %v459_v61 }
  0x3e   :  { %673 = vmatpush.msrb.mxu3 %v367_v18 }
  0x3f   :  { %491 = vmatpush.msra.mxu2 %v458_v62 }
  0x40   :  { %674 = vmatpush.msrb.mxu3 %v366_v19 }
  0x41   :  { %492 = vmatpush.msra.mxu2 %v457_v63 }
  0x42   :  { %675 = vmatpush.msrb.mxu3 %v365_v20 }
  0x44   :  { %676 = vmatpush.msrb.mxu3 %v364_v22 }
  0x45   :  { %269 = vmatmul.bf16.gmra.mxu0 %v654_v10  ;;  %299 = vmatmul.bf16.gmra.mxu3 %v660_v11 }
  0x46   :  { %677 = vmatpush.msrb.mxu3 %v363_v23 }
  0x48   :  { %678 = vmatpush.msrb.mxu3 %v362_v24 }
  0x4a   :  { %679 = vmatpush.msrb.mxu3 %v361_v25 }
  0x4c   :  { %680 = vmatpush.msrb.mxu3 %v360_v26 }
  0x4e   :  { %681 = vmatpush.msrb.mxu3 %v359_v27 }
  0x50   :  { %682 = vmatpush.msrb.mxu3 %v358_v28 }
  0x52   :  { %683 = vmatpush.msrb.mxu3 %v357_v29 }
  0x54   :  { %684 = vmatpush.msrb.mxu3 %v356_v31 }
  0x55   :  { %274 = vmatmul.bf16.gmra.mxu0 %v655_v12 }
  0x56   :  { %685 = vmatpush.msra.mxu3 %v472_v44 }
  0x58   :  { %686 = vmatpush.msra.mxu3 %v471_v45 }
  0x5a   :  { %687 = vmatpush.msra.mxu3 %v470_v46 }
  0x5c   :  { %688 = vmatpush.msra.mxu3 %v469_v47 }
  0x5e   :  { %689 = vmatpush.msra.mxu3 %v468_v48 }
  0x60   :  { %690 = vmatpush.msra.mxu3 %v467_v50 }
  0x62   :  { %691 = vmatpush.msra.mxu3 %v466_v51 }
  0x64   :  { %692 = vmatpush.msra.mxu3 %v465_v52 }
  0x65   :  { %279 = vmatmul.bf16.gmra.mxu0 %v656_v13 }
  0x66   :  { %693 = vmatpush.msra.mxu3 %v464_v53 }
  0x68   :  { %694 = vmatpush.msra.mxu3 %v463_v55 }
  0x6a   :  { %695 = vmatpush.msra.mxu3 %v462_v56 }
  0x6c   :  { %696 = vmatpush.msra.mxu3 %v461_v57 }
  0x6e   :  { %697 = vmatpush.msra.mxu3 %v460_v58 }
  0x70   :  { %698 = vmatpush.msra.mxu3 %v459_v61 }
  0x72   :  { %699 = vmatpush.msra.mxu3 %v458_v62 }
  0x74   :  { %700 = vmatpush.msra.mxu3 %v457_v63 }
  0x75   :  { %284 = vmatmul.bf16.gmra.mxu0 %v657_v21 }
  0x85   :  { %289 = vmatmul.bf16.gmra.mxu0 %v658_v30 }
  0xb2   :  { %v265_v32 = vpop.f32.mrf.mxu0 }
  0xb3   :  { %392 = vmatmul.f32.vlgmr.msra.gmra.mxu1 %v265_v32 }
  0xb8   :  { %v295_v35 = vpop.f32.mrf.mxu3 }
  0xb9   :  { %428 = vmatmul.f32.vlgmr.msrb.gmra.mxu3 %v295_v35 }
  0xba   :  { %v267_v33 = vpop.f32.mrf.mxu0 }
  0xbb   :  { %395 = vmatmul.f32.gmra.mxu1 %v267_v33 }
  0xc0   :  { %v297_v37 = vpop.f32.mrf.mxu3 }
  0xc1   :  { %431 = vmatmul.f32.gmra.mxu3 %v297_v37 }
  0xc2   :  { %v270_v34 = vpop.f32.mrf.mxu0 }
  0xc3   :  { %398 = vmatmul.f32.gmra.mxu1 %v270_v34 }
  0xc8   :  { %v300_v39 = vpop.f32.mrf.mxu3 }
  0xc9   :  { %434 = vmatmul.f32.gmra.mxu3 %v300_v39 }
  0xca   :  { %v272_v36 = vpop.f32.mrf.mxu0 }
  0xcb   :  { %401 = vmatmul.f32.gmra.mxu1 %v272_v36 }
  0xd0   :  { %v302_v41 = vpop.f32.mrf.mxu3 }
  0xd1   :  { %437 = vmatmul.f32.gmra.mxu3 %v302_v41 }
  0xd2   :  { %v275_v38 = vpop.f32.mrf.mxu0 }
  0xd3   :  { %404 = vmatmul.f32.gmra.mxu1 %v275_v38 }
  0xda   :  { %v277_v40 = vpop.f32.mrf.mxu0 }
  0xdb   :  { %407 = vmatmul.f32.gmra.mxu1 %v277_v40 }
  0xe2   :  { %v280_v42 = vpop.f32.mrf.mxu0 }
  0xe3   :  { %410 = vmatmul.f32.gmra.mxu1 %v280_v42 }
  0xea   :  { %v282_v43 = vpop.f32.mrf.mxu0 }
  0xeb   :  { %413 = vmatmul.f32.gmra.mxu1 %v282_v43 }
  0xf2   :  { %v285_v49 = vpop.f32.mrf.mxu0 }
  0xf3   :  { %416 = vmatmul.f32.gmra.mxu1 %v285_v49  ;;  %v711_v49 = vld [vmem:[%s919_s5] ss:$0 sm:$0xff]  ;;  %s848_s5 = smov [#allocation11]  }
  0xf4   :  { %s562_s20 = sshll.u32 %s848_s5, 4  ;;  %s563_s20 = int_to_ptr.vmem [resolvable:$true] %s562_s20 }
  0xfa   :  { %v287_v54 = vpop.f32.mrf.mxu0 }
  0xfb   :  { %419 = vmatmul.f32.gmra.mxu1 %v287_v54 }
 0x102   :  { %v290_v59 = vpop.f32.mrf.mxu0 }
 0x103   :  { %422 = vmatmul.f32.gmra.mxu1 %v290_v59 }
 0x10a   :  { %v292_v60 = vpop.f32.mrf.mxu0 }
 0x10b   :  { %425 = vmatmul.f32.gmra.mxu1 %v292_v60 }
 0x130   :  { %v393_v1 = vpop.f32.mrf.mxu1 }
 0x131   :  { %v394_v2 = vadd.f32 %v710_v0, %v393_v1 }
 0x133   :  { %v441_v3 = vmax.f32 %v394_v2, 0.0 }
 0x135   :  { %493 = vmatmul.f32.vlgmr.msra.gmra.mxu2 %v441_v3 }
 0x138   :  { %v396_v4 = vpop.f32.mrf.mxu1 }
 0x139   :  { %v397_v5 = vadd.f32 %v710_v0, %v396_v4 }
 0x13b   :  { %v442_v6 = vmax.f32 %v397_v5, 0.0 }
 0x13c   :  { %v429_v11 = vpop.f32.mrf.mxu3 }
 0x13d   :  { %496 = vmatmul.f32.gmra.mxu2 %v442_v6  ;;  %v430_v13 = vadd.f32 %v710_v0, %v429_v11 }
 0x13f   :  { %v453_v15 = vmax.f32 %v430_v13, 0.0 }
 0x140   :  { %v399_v7 = vpop.f32.mrf.mxu1 }
 0x141   :  { %v400_v8 = vadd.f32 %v710_v0, %v399_v7  ;;  %529 = vmatmul.f32.vlgmr.msra.gmra.mxu3 %v453_v15 }
 0x143   :  { %v443_v9 = vmax.f32 %v400_v8, 0.0 }
 0x144   :  { %v432_v17 = vpop.f32.mrf.mxu3 }
 0x145   :  { %499 = vmatmul.f32.gmra.mxu2 %v443_v9  ;;  %v433_v19 = vadd.f32 %v710_v0, %v432_v17 }
 0x147   :  { %v454_v21 = vmax.f32 %v433_v19, 0.0 }
 0x148   :  { %v402_v10 = vpop.f32.mrf.mxu1 }
 0x149   :  { %v403_v12 = vadd.f32 %v710_v0, %v402_v10  ;;  %532 = vmatmul.f32.gmra.mxu3 %v454_v21 }
 0x14b   :  { %v444_v14 = vmax.f32 %v403_v12, 0.0 }
 0x14c   :  { %v435_v23 = vpop.f32.mrf.mxu3 }
 0x14d   :  { %502 = vmatmul.f32.gmra.mxu2 %v444_v14  ;;  %v436_v25 = vadd.f32 %v710_v0, %v435_v23 }
 0x14f   :  { %v455_v27 = vmax.f32 %v436_v25, 0.0 }
 0x150   :  { %v405_v16 = vpop.f32.mrf.mxu1 }
 0x151   :  { %v406_v18 = vadd.f32 %v710_v0, %v405_v16  ;;  %535 = vmatmul.f32.gmra.mxu3 %v455_v27 }
 0x153   :  { %v445_v20 = vmax.f32 %v406_v18, 0.0 }
 0x154   :  { %v438_v29 = vpop.f32.mrf.mxu3 }
 0x155   :  { %505 = vmatmul.f32.gmra.mxu2 %v445_v20  ;;  %v439_v31 = vadd.f32 %v710_v0, %v438_v29 }
 0x157   :  { %v456_v33 = vmax.f32 %v439_v31, 0.0 }
 0x158   :  { %v408_v22 = vpop.f32.mrf.mxu1 }
 0x159   :  { %v409_v24 = vadd.f32 %v710_v0, %v408_v22  ;;  %538 = vmatmul.f32.gmra.mxu3 %v456_v33 }
 0x15b   :  { %v446_v26 = vmax.f32 %v409_v24, 0.0 }
 0x15d   :  { %508 = vmatmul.f32.gmra.mxu2 %v446_v26 }
 0x160   :  { %v411_v28 = vpop.f32.mrf.mxu1 }
 0x161   :  { %v412_v30 = vadd.f32 %v710_v0, %v411_v28 }
 0x163   :  { %v447_v32 = vmax.f32 %v412_v30, 0.0 }
 0x165   :  { %511 = vmatmul.f32.gmra.mxu2 %v447_v32 }
 0x168   :  { %v414_v34 = vpop.f32.mrf.mxu1 }
 0x169   :  { %v415_v35 = vadd.f32 %v710_v0, %v414_v34 }
 0x16b   :  { %v448_v36 = vmax.f32 %v415_v35, 0.0 }
 0x16d   :  { %514 = vmatmul.f32.gmra.mxu2 %v448_v36 }
 0x170   :  { %v417_v37 = vpop.f32.mrf.mxu1 }
 0x171   :  { %v418_v38 = vadd.f32 %v710_v0, %v417_v37 }
 0x173   :  { %v449_v39 = vmax.f32 %v418_v38, 0.0 }
 0x175   :  { %517 = vmatmul.f32.gmra.mxu2 %v449_v39 }
 0x178   :  { %v420_v40 = vpop.f32.mrf.mxu1 }
 0x179   :  { %v421_v41 = vadd.f32 %v710_v0, %v420_v40 }
 0x17b   :  { %v450_v42 = vmax.f32 %v421_v41, 0.0 }
 0x17d   :  { %520 = vmatmul.f32.gmra.mxu2 %v450_v42 }
 0x180   :  { %v423_v43 = vpop.f32.mrf.mxu1 }
 0x181   :  { %v424_v44 = vadd.f32 %v710_v0, %v423_v43 }
 0x183   :  { %v451_v45 = vmax.f32 %v424_v44, 0.0 }
 0x185   :  { %523 = vmatmul.f32.gmra.mxu2 %v451_v45 }
 0x188   :  { %v426_v46 = vpop.f32.mrf.mxu1 }
 0x189   :  { %v427_v47 = vadd.f32 %v710_v0, %v426_v46 }
 0x18b   :  { %v452_v48 = vmax.f32 %v427_v47, 0.0 }
 0x18d   :  { %526 = vmatmul.f32.gmra.mxu2 %v452_v48 }
 0x1b8   :  { %v494_v50 = vpop.f32.mrf.mxu2 }
 0x1b9   :  { %v495_v51 = vadd.f32 %v711_v49, %v494_v50 }
 0x1bb   :  { %542 = vst [vmem:[#allocation11] sm:$0xff] %v495_v51 }
 0x1c0   :  { %v497_v52 = vpop.f32.mrf.mxu2 }
 0x1c1   :  { %v498_v53 = vadd.f32 %v711_v49, %v497_v52 }
 0x1c3   :  { %543 = vst [vmem:[#allocation11 + $0x8] sm:$0xff] %v498_v53 }
 0x1c4   :  { %v530_v57 = vpop.f32.mrf.mxu3 }
 0x1c5   :  { %v531_v59 = vadd.f32 %v711_v49, %v530_v57 }
 0x1c7   :  { %554 = vst [vmem:[#allocation11 + $0x60] sm:$0xff] %v531_v59 }
 0x1c8   :  { %v500_v54 = vpop.f32.mrf.mxu2 }
 0x1c9   :  { %v501_v55 = vadd.f32 %v711_v49, %v500_v54 }
 0x1cb   :  { %544 = vst [vmem:[#allocation11 + $0x10] sm:$0xff] %v501_v55 }
 0x1cc   :  { %v533_v61 = vpop.f32.mrf.mxu3 }
 0x1cd   :  { %v534_v63 = vadd.f32 %v711_v49, %v533_v61 }
 0x1cf   :  { %555 = vst [vmem:[#allocation11 + $0x68] sm:$0xff] %v534_v63 }
 0x1d0   :  { %v503_v56 = vpop.f32.mrf.mxu2 }
 0x1d1   :  { %v504_v58 = vadd.f32 %v711_v49, %v503_v56 }
 0x1d3   :  { %545 = vst [vmem:[#allocation11 + $0x18] sm:$0xff] %v504_v58 }
 0x1d4   :  { %v536_v1 = vpop.f32.mrf.mxu3 }
 0x1d5   :  { %v537_v3 = vadd.f32 %v711_v49, %v536_v1 }
 0x1d7   :  { %556 = vst [vmem:[#allocation11 + $0x70] sm:$0xff] %v537_v3 }
 0x1d8   :  { %v506_v60 = vpop.f32.mrf.mxu2 }
 0x1d9   :  { %v507_v62 = vadd.f32 %v711_v49, %v506_v60 }
 0x1db   :  { %546 = vst [vmem:[#allocation11 + $0x20] sm:$0xff] %v507_v62 }
 0x1dc   :  { %v539_v5 = vpop.f32.mrf.mxu3 }
 0x1dd   :  { %v540_v7 = vadd.f32 %v711_v49, %v539_v5 }
 0x1df   :  { %557 = vst [vmem:[#allocation11 + $0x78] sm:$0xff] %v540_v7 }
 0x1e0   :  { %v509_v0 = vpop.f32.mrf.mxu2 }
 0x1e1   :  { %v510_v2 = vadd.f32 %v711_v49, %v509_v0 }
 0x1e3   :  { %547 = vst [vmem:[#allocation11 + $0x28] sm:$0xff] %v510_v2 }
 0x1e8   :  { %v512_v4 = vpop.f32.mrf.mxu2 }
 0x1e9   :  { %v513_v6 = vadd.f32 %v711_v49, %v512_v4 }
 0x1eb   :  { %548 = vst [vmem:[#allocation11 + $0x30] sm:$0xff] %v513_v6 }
 0x1f0   :  { %v515_v8 = vpop.f32.mrf.mxu2 }
 0x1f1   :  { %v516_v9 = vadd.f32 %v711_v49, %v515_v8 }
 0x1f3   :  { %549 = vst [vmem:[#allocation11 + $0x38] sm:$0xff] %v516_v9 }
 0x1f8   :  { %v518_v10 = vpop.f32.mrf.mxu2 }
 0x1f9   :  { %v519_v11 = vadd.f32 %v711_v49, %v518_v10 }
 0x1fb   :  { %550 = vst [vmem:[#allocation11 + $0x40] sm:$0xff] %v519_v11 }
 0x200   :  { %v521_v12 = vpop.f32.mrf.mxu2 }
 0x201   :  { %v522_v13 = vadd.f32 %v711_v49, %v521_v12 }
 0x203   :  { %551 = vst [vmem:[#allocation11 + $0x48] sm:$0xff] %v522_v13 }
 0x208   :  { %v524_v14 = vpop.f32.mrf.mxu2 }
 0x209   :  { %v525_v15 = vadd.f32 %v711_v49, %v524_v14 }
 0x20b   :  { %552 = vst [vmem:[#allocation11 + $0x50] sm:$0xff] %v525_v15 }
 0x210   :  { %v527_v16 = vpop.f32.mrf.mxu2 }
 0x211   :  { %v528_v17 = vadd.f32 %v711_v49, %v527_v16 }
 0x213   :  { %553 = vst [vmem:[#allocation11 + $0x58] sm:$0xff] %v528_v17 }
 0x214   :  { %570 = dma.vmem_to_hbm [thread:$0]  %s563_s20, 2048, %s565_s23, [#allocation5], %s845_s15, %s845_s15, %s846_s16  }
 0x215   :  { %838 = dma.done.wait [#allocation5], 2048  }
 0x216   :  { %839 = vsyncadd [#allocation5], 4294965248 }
 0x217   :  { %575 = vsyncpa [#allocation4], 1 }
 0x218   :  { %576 = vsyncpa [#allocation7], 1 }
 0x219   :  { %577 = vsyncpa [#allocation10], 1 }
 0x21a   :  { %578 = vsyncpa [#allocation5], 1 }

</bundles_post_ra>
